<compile_context>
chip_gen: v6e
topology: v6e:2x2x1
jax: 0.10.0
libtpu: 0.0.40
codegen_flags: <defaults>
</compile_context>

<pallas_src>
import jax
import jax.numpy as jnp
from jax.experimental import pallas as pl
from jax.experimental.pallas import tpu as pltpu

_HIDDEN_DIMS = (32, 16, 8, 16, 32)


def _round_up(n, m):
    return ((n + m - 1) // m) * m


def _autoencoder_kernel(x_ref,
                        w1, b1, w2, b2, w3, b3,
                        w4, b4, w5, b5, w6, b6,
                        out_ref):
    """Fused encoder+decoder forward for one (row-packed) batch tile."""
    h = x_ref[...]

    def dense(h, w_ref, b_ref):
        # MXU matmul with f32 accumulation; bias / activations stay in f32.
        return (jnp.dot(h.astype(w_ref.dtype), w_ref[...],
                        preferred_element_type=jnp.float32)
                + b_ref[...].astype(jnp.float32))

    # Encoder: Linear -> ReLU  (x3)
    h = jnp.maximum(dense(h, w1, b1), 0.0)
    h = jnp.maximum(dense(h, w2, b2), 0.0)
    h = jnp.maximum(dense(h, w3, b3), 0.0)
    # Decoder: Linear -> ReLU (x2), Linear -> Sigmoid
    h = jnp.maximum(dense(h, w4, b4), 0.0)
    h = jnp.maximum(dense(h, w5, b5), 0.0)
    out_ref[...] = jax.nn.sigmoid(dense(h, w6, b6)).astype(out_ref.dtype)


def _pack_params(params, compute_dtype):
    """Fold each (in,out) weight into a 2x block-diagonal (2in,2out) matrix so
    two batch rows packed in one 128-lane row flow through the layer
    independently: [x1 x2] @ blkdiag(W, W) = [x1@W, x2@W]."""
    packed = []
    for w, b in params:
        fan_in, fan_out = w.shape
        w2 = jnp.zeros((2 * fan_in, 2 * fan_out), w.dtype)
        w2 = w2.at[:fan_in, :fan_out].set(w)
        w2 = w2.at[fan_in:, fan_out:].set(w)
        b2 = jnp.concatenate([b, b], axis=-1)                  # (1, 2*out)
        packed.append((w2.astype(compute_dtype), b2.astype(jnp.float32)))
    return packed


def autoencoder_forward(x, params, *, tile_rows=1024, compute_dtype=jnp.float32):
    """x: (B, input_dim) float32; params: list of (W_T, b), W_T=(in,out), b=(1,out).

    tile_rows is the number of *packed* rows per grid step (1 packed row = 2
    batch rows). Default 1024 packed rows => 2048 batch rows/tile: ~1 MiB per
    double-buffered 128-lane tile, safe on v7x's 64 MiB VMEM while large
    enough to amortize per-step overhead on v5e/v6e.
    """
    B, D = x.shape
    orig_dtype = x.dtype

    # --- lane-dense packing: (B, D) -> (P, 2D); rows are contiguous so the
    #     reshape is free and packed row i = [x[2i], x[2i+1]]. ---
    P = pl.cdiv(B, 2)
    pad_b = 2 * P - B
    if pad_b:
        x = jnp.pad(x, ((0, pad_b), (0, 0)))
    xp = x.reshape(P, 2 * D)

    # --- batch tiling: multiple of 8 sublanes, capped so small batches don't
    #     pad up to a huge tile; ragged batches handled by padding. ---
    tile = max(8, min(_round_up(tile_rows, 8), _round_up(P, 8)))
    P_pad = _round_up(P, tile)
    if P_pad != P:
        xp = jnp.pad(xp, ((0, P_pad - P), (0, 0)))
    grid = (P_pad // tile,)

    xp = xp.astype(compute_dtype)
    packed = _pack_params(params, compute_dtype)

    flat_params = []
    in_specs = [pl.BlockSpec((tile, 2 * D), lambda i: (i, 0))]
    for w, b in packed:
        flat_params.append(w)
        flat_params.append(b)
        in_specs.append(pl.BlockSpec(w.shape, lambda i: (0, 0)))   # weight resident
        in_specs.append(pl.BlockSpec(b.shape, lambda i: (0, 0)))   # bias resident

    # Scheduler hint: this call is tiny & mem-bound; let XLA overlap it.
    dims = (D,) + _HIDDEN_DIMS + (D,)
    flops = 2 * (2 * P_pad) * sum(a * b for a, b in zip(dims[:-1], dims[1:]))
    bytes_io = (xp.size * xp.dtype.itemsize                         # x stream
                + P_pad * 2 * D * jnp.dtype(orig_dtype).itemsize    # out stream
                + sum(w.size * w.dtype.itemsize + b.size * b.dtype.itemsize
                      for w, b in packed))                          # weights
    cost = pl.CostEstimate(flops=flops,
                           transcendentals=2 * P_pad * D,           # sigmoid exps
                           bytes_accessed=bytes_io)

    out_p = pl.pallas_call(
        _autoencoder_kernel,
        out_shape=jax.ShapeDtypeStruct((P_pad, 2 * D), orig_dtype),
        grid_spec=pltpu.PrefetchScalarGridSpec(
            num_scalar_prefetch=0,
            grid=grid,
            in_specs=in_specs,
            out_specs=pl.BlockSpec((tile, 2 * D), lambda i: (i, 0)),
        ),
        compiler_params=pltpu.CompilerParams(
            dimension_semantics=("parallel",),       # megacore split on v7x
            vmem_limit_bytes=32 * 1024 * 1024,
        ),
        cost_estimate=cost,
    )(xp, *flat_params)

    # Unpack: (P_pad, 2D) -> (2P, D) -> drop padded rows.
    return out_p[:P].reshape(2 * P, D)[:B]


def init_params(key, input_dim):
    """Deterministic init mirroring nn.Linear defaults: U(-1/sqrt(fan_in), ...).
    Weights are returned already transposed to (in, out); biases as (1, out)."""
    dims = (input_dim,) + _HIDDEN_DIMS + (input_dim,)
    params = []
    for idx in range(len(dims) - 1):
        fan_in, fan_out = dims[idx], dims[idx + 1]
        key, kw, kb = jax.random.split(key, 3)
        bound = 1.0 / jnp.sqrt(fan_in)
        w = jax.random.uniform(kw, (fan_in, fan_out), jnp.float32, -bound, bound)
        b = jax.random.uniform(kb, (1, fan_out), jnp.float32, -bound, bound)
        params.append((w, b))
    return params


def reference_forward(x, params):
    """Pure-JAX reference for correctness check."""
    h = x
    n = len(params)
    for i, (w, b) in enumerate(params):
        h = h @ w + b
        h = jnp.maximum(h, 0.0) if i < n - 1 else jax.nn.sigmoid(h)
    return h


if __name__ == "__main__":
    input_dim = 64
    params = init_params(jax.random.PRNGKey(0), input_dim)

    # Run 1: small even batch, single grid step.
    key = jax.random.PRNGKey(0)
    key, kx = jax.random.split(key)
    x = jax.random.uniform(kx, (8, input_dim), jnp.float32)
    out = jax.block_until_ready(autoencoder_forward(x, params))
    ref = reference_forward(x, params)
    assert out.shape == x.shape
    assert jnp.allclose(out, ref, atol=1e-5, rtol=1e-5)

    # Run 2: ragged / odd batch with a small tile -> multi-step grid exercises
    # pipelining, padding and the unpack path.
    key, kx2 = jax.random.split(key)
    x2 = jax.random.uniform(kx2, (41, input_dim), jnp.float32)
    out2 = jax.block_until_ready(autoencoder_forward(x2, params, tile_rows=8))
    ref2 = reference_forward(x2, params)
    assert out2.shape == x2.shape
    assert jnp.allclose(out2, ref2, atol=1e-5, rtol=1e-5)

    print("KERNEL_OK")
</pallas_src>

<mosaic_0001>
module attributes {stable_mosaic.version = 11 : i64} {
  func.func @_autoencoder_kernel(%arg0: i32, %arg1: memref<8x128xf32, #tpu.memory_space<vmem>>, %arg2: memref<128x64xf32, #tpu.memory_space<vmem>>, %arg3: memref<1x64xf32, #tpu.memory_space<vmem>>, %arg4: memref<64x32xf32, #tpu.memory_space<vmem>>, %arg5: memref<1x32xf32, #tpu.memory_space<vmem>>, %arg6: memref<32x16xf32, #tpu.memory_space<vmem>>, %arg7: memref<1x16xf32, #tpu.memory_space<vmem>>, %arg8: memref<16x32xf32, #tpu.memory_space<vmem>>, %arg9: memref<1x32xf32, #tpu.memory_space<vmem>>, %arg10: memref<32x64xf32, #tpu.memory_space<vmem>>, %arg11: memref<1x64xf32, #tpu.memory_space<vmem>>, %arg12: memref<64x128xf32, #tpu.memory_space<vmem>>, %arg13: memref<1x128xf32, #tpu.memory_space<vmem>>, %arg14: memref<8x128xf32, #tpu.memory_space<vmem>>) attributes {dimension_semantics = [#tpu.dimension_semantics<parallel>], iteration_bounds = array<i64: 1>, scalar_prefetch = 0 : i64, scratch_operands = 0 : i64, tpu.core_type = #tpu.core_type<tc>, window_params = [{transform_indices = @transform_0, window_bounds = array<i64: 8, 128>}, {pipeline_mode = #tpu.pipeline_mode<synchronous>, transform_indices = @transform_1, window_bounds = array<i64: 128, 64>}, {pipeline_mode = #tpu.pipeline_mode<synchronous>, transform_indices = @transform_2, window_bounds = array<i64: 1, 64>}, {pipeline_mode = #tpu.pipeline_mode<synchronous>, transform_indices = @transform_3, window_bounds = array<i64: 64, 32>}, {pipeline_mode = #tpu.pipeline_mode<synchronous>, transform_indices = @transform_4, window_bounds = array<i64: 1, 32>}, {pipeline_mode = #tpu.pipeline_mode<synchronous>, transform_indices = @transform_5, window_bounds = array<i64: 32, 16>}, {pipeline_mode = #tpu.pipeline_mode<synchronous>, transform_indices = @transform_6, window_bounds = array<i64: 1, 16>}, {pipeline_mode = #tpu.pipeline_mode<synchronous>, transform_indices = @transform_7, window_bounds = array<i64: 16, 32>}, {pipeline_mode = #tpu.pipeline_mode<synchronous>, transform_indices = @transform_8, window_bounds = array<i64: 1, 32>}, {pipeline_mode = #tpu.pipeline_mode<synchronous>, transform_indices = @transform_9, window_bounds = array<i64: 32, 64>}, {pipeline_mode = #tpu.pipeline_mode<synchronous>, transform_indices = @transform_10, window_bounds = array<i64: 1, 64>}, {pipeline_mode = #tpu.pipeline_mode<synchronous>, transform_indices = @transform_11, window_bounds = array<i64: 64, 128>}, {pipeline_mode = #tpu.pipeline_mode<synchronous>, transform_indices = @transform_12, window_bounds = array<i64: 1, 128>}, {transform_indices = @transform_13, window_bounds = array<i64: 8, 128>}]} {
    %c0 = arith.constant 0 : index
    %c0_0 = arith.constant 0 : index
    %0 = vector.load %arg1[%c0, %c0_0] : memref<8x128xf32, #tpu.memory_space<vmem>>, vector<8x128xf32>
    %c0_1 = arith.constant 0 : index
    %c0_2 = arith.constant 0 : index
    %1 = vector.load %arg2[%c0_1, %c0_2] : memref<128x64xf32, #tpu.memory_space<vmem>>, vector<128x64xf32>
    %cst = arith.constant dense<0.000000e+00> : vector<8x64xf32>
    %2 = tpu.matmul %0, %1, %cst {dimension_numbers = #tpu.dot_dimension_numbers<[1], [0], [0], [1], [0, 0, 1, 1], [], []>} : vector<8x128xf32>, vector<128x64xf32>, vector<8x64xf32> -> vector<8x64xf32>
    %c0_3 = arith.constant 0 : index
    %c0_4 = arith.constant 0 : index
    %3 = vector.load %arg3[%c0_3, %c0_4] : memref<1x64xf32, #tpu.memory_space<vmem>>, vector<1x64xf32>
    %4 = vector.broadcast %3 : vector<1x64xf32> to vector<8x64xf32>
    %5 = arith.addf %2, %4 : vector<8x64xf32>
    %cst_5 = arith.constant 0.000000e+00 : f32
    %6 = vector.broadcast %cst_5 : f32 to vector<8x64xf32>
    %7 = arith.maximumf %5, %6 : vector<8x64xf32>
    %c0_6 = arith.constant 0 : index
    %c0_7 = arith.constant 0 : index
    %8 = vector.load %arg4[%c0_6, %c0_7] : memref<64x32xf32, #tpu.memory_space<vmem>>, vector<64x32xf32>
    %cst_8 = arith.constant dense<0.000000e+00> : vector<8x32xf32>
    %9 = tpu.matmul %7, %8, %cst_8 {dimension_numbers = #tpu.dot_dimension_numbers<[1], [0], [0], [1], [0, 0, 1, 1], [], []>} : vector<8x64xf32>, vector<64x32xf32>, vector<8x32xf32> -> vector<8x32xf32>
    %c0_9 = arith.constant 0 : index
    %c0_10 = arith.constant 0 : index
    %10 = vector.load %arg5[%c0_9, %c0_10] : memref<1x32xf32, #tpu.memory_space<vmem>>, vector<1x32xf32>
    %11 = vector.broadcast %10 : vector<1x32xf32> to vector<8x32xf32>
    %12 = arith.addf %9, %11 : vector<8x32xf32>
    %cst_11 = arith.constant 0.000000e+00 : f32
    %13 = vector.broadcast %cst_11 : f32 to vector<8x32xf32>
    %14 = arith.maximumf %12, %13 : vector<8x32xf32>
    %c0_12 = arith.constant 0 : index
    %c0_13 = arith.constant 0 : index
    %15 = vector.load %arg6[%c0_12, %c0_13] : memref<32x16xf32, #tpu.memory_space<vmem>>, vector<32x16xf32>
    %cst_14 = arith.constant dense<0.000000e+00> : vector<8x16xf32>
    %16 = tpu.matmul %14, %15, %cst_14 {dimension_numbers = #tpu.dot_dimension_numbers<[1], [0], [0], [1], [0, 0, 1, 1], [], []>} : vector<8x32xf32>, vector<32x16xf32>, vector<8x16xf32> -> vector<8x16xf32>
    %c0_15 = arith.constant 0 : index
    %c0_16 = arith.constant 0 : index
    %17 = vector.load %arg7[%c0_15, %c0_16] : memref<1x16xf32, #tpu.memory_space<vmem>>, vector<1x16xf32>
    %18 = vector.broadcast %17 : vector<1x16xf32> to vector<8x16xf32>
    %19 = arith.addf %16, %18 : vector<8x16xf32>
    %cst_17 = arith.constant 0.000000e+00 : f32
    %20 = vector.broadcast %cst_17 : f32 to vector<8x16xf32>
    %21 = arith.maximumf %19, %20 : vector<8x16xf32>
    %c0_18 = arith.constant 0 : index
    %c0_19 = arith.constant 0 : index
    %22 = vector.load %arg8[%c0_18, %c0_19] : memref<16x32xf32, #tpu.memory_space<vmem>>, vector<16x32xf32>
    %cst_20 = arith.constant dense<0.000000e+00> : vector<8x32xf32>
    %23 = tpu.matmul %21, %22, %cst_20 {dimension_numbers = #tpu.dot_dimension_numbers<[1], [0], [0], [1], [0, 0, 1, 1], [], []>} : vector<8x16xf32>, vector<16x32xf32>, vector<8x32xf32> -> vector<8x32xf32>
    %c0_21 = arith.constant 0 : index
    %c0_22 = arith.constant 0 : index
    %24 = vector.load %arg9[%c0_21, %c0_22] : memref<1x32xf32, #tpu.memory_space<vmem>>, vector<1x32xf32>
    %25 = vector.broadcast %24 : vector<1x32xf32> to vector<8x32xf32>
    %26 = arith.addf %23, %25 : vector<8x32xf32>
    %cst_23 = arith.constant 0.000000e+00 : f32
    %27 = vector.broadcast %cst_23 : f32 to vector<8x32xf32>
    %28 = arith.maximumf %26, %27 : vector<8x32xf32>
    %c0_24 = arith.constant 0 : index
    %c0_25 = arith.constant 0 : index
    %29 = vector.load %arg10[%c0_24, %c0_25] : memref<32x64xf32, #tpu.memory_space<vmem>>, vector<32x64xf32>
    %cst_26 = arith.constant dense<0.000000e+00> : vector<8x64xf32>
    %30 = tpu.matmul %28, %29, %cst_26 {dimension_numbers = #tpu.dot_dimension_numbers<[1], [0], [0], [1], [0, 0, 1, 1], [], []>} : vector<8x32xf32>, vector<32x64xf32>, vector<8x64xf32> -> vector<8x64xf32>
    %c0_27 = arith.constant 0 : index
    %c0_28 = arith.constant 0 : index
    %31 = vector.load %arg11[%c0_27, %c0_28] : memref<1x64xf32, #tpu.memory_space<vmem>>, vector<1x64xf32>
    %32 = vector.broadcast %31 : vector<1x64xf32> to vector<8x64xf32>
    %33 = arith.addf %30, %32 : vector<8x64xf32>
    %cst_29 = arith.constant 0.000000e+00 : f32
    %34 = vector.broadcast %cst_29 : f32 to vector<8x64xf32>
    %35 = arith.maximumf %33, %34 : vector<8x64xf32>
    %c0_30 = arith.constant 0 : index
    %c0_31 = arith.constant 0 : index
    %36 = vector.load %arg12[%c0_30, %c0_31] : memref<64x128xf32, #tpu.memory_space<vmem>>, vector<64x128xf32>
    %cst_32 = arith.constant dense<0.000000e+00> : vector<8x128xf32>
    %37 = tpu.matmul %35, %36, %cst_32 {dimension_numbers = #tpu.dot_dimension_numbers<[1], [0], [0], [1], [0, 0, 1, 1], [], []>} : vector<8x64xf32>, vector<64x128xf32>, vector<8x128xf32> -> vector<8x128xf32>
    %c0_33 = arith.constant 0 : index
    %c0_34 = arith.constant 0 : index
    %38 = vector.load %arg13[%c0_33, %c0_34] : memref<1x128xf32, #tpu.memory_space<vmem>>, vector<1x128xf32>
    %39 = vector.broadcast %38 : vector<1x128xf32> to vector<8x128xf32>
    %40 = arith.addf %37, %39 : vector<8x128xf32>
    %41 = arith.negf %40 : vector<8x128xf32>
    %42 = math.exp %41 : vector<8x128xf32>
    %cst_35 = arith.constant 1.000000e+00 : f32
    %43 = vector.broadcast %cst_35 : f32 to vector<8x128xf32>
    %44 = arith.addf %43, %42 : vector<8x128xf32>
    %45 = arith.divf %43, %44 : vector<8x128xf32>
    %c0_36 = arith.constant 0 : index
    %c0_37 = arith.constant 0 : index
    %46 = vector.load %arg14[%c0_36, %c0_37] : memref<8x128xf32, #tpu.memory_space<vmem>>, vector<8x128xf32>
    tpu.vector_store %arg14[%c0_36, %c0_37], %45 {strides = array<i32>} : memref<8x128xf32, #tpu.memory_space<vmem>>, vector<8x128xf32>,
    return
  }
  func.func @transform_0(%arg0: i32) -> (i32, i32) {
    %c0_i32 = arith.constant 0 : i32
    %c0_i32_0 = arith.constant 0 : i32
    return %arg0, %c0_i32 : i32, i32
  }
  func.func @transform_1(%arg0: i32) -> (i32, i32) {
    %c0_i32 = arith.constant 0 : i32
    %c0_i32_0 = arith.constant 0 : i32
    %c0_i32_1 = arith.constant 0 : i32
    return %c0_i32, %c0_i32_0 : i32, i32
  }
  func.func @transform_2(%arg0: i32) -> (i32, i32) {
    %c0_i32 = arith.constant 0 : i32
    %c0_i32_0 = arith.constant 0 : i32
    %c0_i32_1 = arith.constant 0 : i32
    return %c0_i32, %c0_i32_0 : i32, i32
  }
  func.func @transform_3(%arg0: i32) -> (i32, i32) {
    %c0_i32 = arith.constant 0 : i32
    %c0_i32_0 = arith.constant 0 : i32
    %c0_i32_1 = arith.constant 0 : i32
    return %c0_i32, %c0_i32_0 : i32, i32
  }
  func.func @transform_4(%arg0: i32) -> (i32, i32) {
    %c0_i32 = arith.constant 0 : i32
    %c0_i32_0 = arith.constant 0 : i32
    %c0_i32_1 = arith.constant 0 : i32
    return %c0_i32, %c0_i32_0 : i32, i32
  }
  func.func @transform_5(%arg0: i32) -> (i32, i32) {
    %c0_i32 = arith.constant 0 : i32
    %c0_i32_0 = arith.constant 0 : i32
    %c0_i32_1 = arith.constant 0 : i32
    return %c0_i32, %c0_i32_0 : i32, i32
  }
  func.func @transform_6(%arg0: i32) -> (i32, i32) {
    %c0_i32 = arith.constant 0 : i32
    %c0_i32_0 = arith.constant 0 : i32
    %c0_i32_1 = arith.constant 0 : i32
    return %c0_i32, %c0_i32_0 : i32, i32
  }
  func.func @transform_7(%arg0: i32) -> (i32, i32) {
    %c0_i32 = arith.constant 0 : i32
    %c0_i32_0 = arith.constant 0 : i32
    %c0_i32_1 = arith.constant 0 : i32
    return %c0_i32, %c0_i32_0 : i32, i32
  }
  func.func @transform_8(%arg0: i32) -> (i32, i32) {
    %c0_i32 = arith.constant 0 : i32
    %c0_i32_0 = arith.constant 0 : i32
    %c0_i32_1 = arith.constant 0 : i32
    return %c0_i32, %c0_i32_0 : i32, i32
  }
  func.func @transform_9(%arg0: i32) -> (i32, i32) {
    %c0_i32 = arith.constant 0 : i32
    %c0_i32_0 = arith.constant 0 : i32
    %c0_i32_1 = arith.constant 0 : i32
    return %c0_i32, %c0_i32_0 : i32, i32
  }
  func.func @transform_10(%arg0: i32) -> (i32, i32) {
    %c0_i32 = arith.constant 0 : i32
    %c0_i32_0 = arith.constant 0 : i32
    %c0_i32_1 = arith.constant 0 : i32
    return %c0_i32, %c0_i32_0 : i32, i32
  }
  func.func @transform_11(%arg0: i32) -> (i32, i32) {
    %c0_i32 = arith.constant 0 : i32
    %c0_i32_0 = arith.constant 0 : i32
    %c0_i32_1 = arith.constant 0 : i32
    return %c0_i32, %c0_i32_0 : i32, i32
  }
  func.func @transform_12(%arg0: i32) -> (i32, i32) {
    %c0_i32 = arith.constant 0 : i32
    %c0_i32_0 = arith.constant 0 : i32
    %c0_i32_1 = arith.constant 0 : i32
    return %c0_i32, %c0_i32_0 : i32, i32
  }
  func.func @transform_13(%arg0: i32) -> (i32, i32) {
    %c0_i32 = arith.constant 0 : i32
    %c0_i32_0 = arith.constant 0 : i32
    return %arg0, %c0_i32 : i32, i32
  }
}

</mosaic_0001>

<bundles_post_ra>
// kernel: tpu_custom_call.1
= control target key start
LH: loop header
LB: loop body
LE: loop exit
PB: predicated region body
PF: predicated region fallthrough
CT: control target
= control target key end

     0   :  { %v785_v1 = vmov 0.0   ;;  %vm786_vm0 = vmmov 0   ;;  %s1066_s0 = inlined_call_operand.vmem [shape: f32[8,128], index: 0, kind: input, shape index: {}]   ;;  %s1067_s1 = inlined_call_operand.vmem [shape: f32[128,64], index: 1, kind: input, shape index: {}]   ;;  %s1068_s2 = inlined_call_operand.vmem [shape: f32[1,64], index: 2, kind: input, shape index: {}]   ;;  %s1069_s3 = inlined_call_operand.vmem [shape: f32[64,32], index: 3, kind: input, shape index: {}]   ;;  %s1070_s4 = inlined_call_operand.vmem [shape: f32[1,32], index: 4, kind: input, shape index: {}]   ;;  %s1071_s5 = inlined_call_operand.vmem [shape: f32[32,16], index: 5, kind: input, shape index: {}]   ;;  %s1072_s6 = inlined_call_operand.vmem [shape: f32[1,16], index: 6, kind: input, shape index: {}]   ;;  %s1073_s7 = inlined_call_operand.vmem [shape: f32[16,32], index: 7, kind: input, shape index: {}]   ;;  %s1074_s8 = inlined_call_operand.vmem [shape: f32[1,32], index: 8, kind: input, shape index: {}]   ;;  %s1075_s9 = inlined_call_operand.vmem [shape: f32[32,64], index: 9, kind: input, shape index: {}]   ;;  %s1076_s10 = inlined_call_operand.vmem [shape: f32[1,64], index: 10, kind: input, shape index: {}]   ;;  %s1077_s11 = inlined_call_operand.vmem [shape: f32[64,128], index: 11, kind: input, shape index: {}]   ;;  %s1078_s12 = inlined_call_operand.vmem [shape: f32[1,128], index: 12, kind: input, shape index: {}]   ;;  %s1079_s13 = inlined_call_operand.hbm [shape: f32[8,128], index: 13, kind: output, shape index: {}]  }
   0x1   :  { %v61_v0 = vld [vmem:[%s1067_s1 + $0x78] sm:$0xff]  ;;  %654 = vmatprep.subr.mxu0 %v785_v1  ;;  %v60_v2 = vld [vmem:[%s1067_s1 + $0x70] sm:$0xff]  ;;  %686 = vmatprep.mubr.msk.f32.mxu0 %vm786_vm0, %v785_v1  ;;  %v59_v3 = vld [vmem:[%s1067_s1 + $0x68] sm:$0xff] }
   0x2   :  { %655 = vmatpush3.msra.mxu0 %v61_v0  ;;  %689 = vmatprep.subr.mxu1 %v785_v1  ;;  %v58_v4 = vld [vmem:[%s1067_s1 + $0x60] sm:$0xff]  ;;  %v147_v5 = vld [vmem:[%s1069_s3 + $0x38] sm:$0xff]  ;;  %v146_v6 = vld [vmem:[%s1069_s3 + $0x30] sm:$0xff] }
   0x3   :  { %656 = vmatprep.subr.mxu0 %v785_v1  ;;  %705 = vmatprep.mubr.msk.f32.mxu1 %vm786_vm0, %v785_v1  ;;  %v57_v7 = vld [vmem:[%s1067_s1 + $0x58] sm:$0xff]  ;;  %v145_v8 = vld [vmem:[%s1069_s3 + $0x28] sm:$0xff] }
   0x4   :  { %657 = vmatpush3.msra.mxu0 %v60_v2  ;;  %690 = vmatpush3.msra.mxu1 %v147_v5 }
   0x5   :  { %658 = vmatprep.subr.mxu0 %v785_v1  ;;  %691 = vmatprep.subr.mxu1 %v785_v1 }
   0x6   :  { %659 = vmatpush3.msra.mxu0 %v59_v3 }
   0x7   :  { %660 = vmatprep.subr.mxu0 %v785_v1 }
   0x8   :  { %18 = vsyncpa [#allocation3], 0  ;;  %661 = vmatpush3.msra.mxu0 %v58_v4  ;;  %692 = vmatpush3.msra.mxu1 %v146_v6  ;;  %v56_v9 = vld [vmem:[%s1067_s1 + $0x50] sm:$0xff]  ;;  %v144_v10 = vld [vmem:[%s1069_s3 + $0x20] sm:$0xff]  ;;  %vm155_vm1 = vcmask 523264   ;;  %vm241_vm2 = vcmask 261120  }
   0x9   :  { %662 = vmatprep.subr.mxu0 %v785_v1  ;;  %693 = vmatprep.subr.mxu1 %v785_v1  ;;  %v55_v11 = vld [vmem:[%s1067_s1 + $0x48] sm:$0xff]  ;;  %v143_v12 = vld [vmem:[%s1069_s3 + $0x18] sm:$0xff]  ;;  %v54_v13 = vld [vmem:[%s1067_s1 + $0x40] sm:$0xff]  ;;  %vm325_vm3 = vcmask 130048  }
   0xa   :  { %663 = vmatpush3.msra.mxu0 %v57_v7  ;;  %694 = vmatpush3.msra.mxu1 %v145_v8  ;;  %v53_v14 = vld [vmem:[%s1067_s1 + $0x38] sm:$0xff]  ;;  %v52_v15 = vld [vmem:[%s1067_s1 + $0x30] sm:$0xff]  ;;  %v51_v16 = vld [vmem:[%s1067_s1 + $0x28] sm:$0xff] }
   0xb   :  { %664 = vmatprep.subr.mxu0 %v785_v1  ;;  %695 = vmatprep.subr.mxu1 %v785_v1  ;;  %v50_v17 = vld [vmem:[%s1067_s1 + $0x20] sm:$0xff]  ;;  %v49_v18 = vld [vmem:[%s1067_s1 + $0x18] sm:$0xff]  ;;  %v48_v19 = vld [vmem:[%s1067_s1 + $0x10] sm:$0xff] }
   0xc   :  { %665 = vmatpush3.msra.mxu0 %v56_v9  ;;  %696 = vmatpush3.msra.mxu1 %v144_v10  ;;  %v47_v20 = vld [vmem:[%s1067_s1 + $0x8] sm:$0xff]  ;;  %v46_v21 = vld [vmem:[%s1067_s1] sm:$0xff]  ;;  %v142_v23 = vld [vmem:[%s1069_s3 + $0x10] sm:$0xff] }
   0xd   :  { %666 = vmatprep.subr.mxu0 %v785_v1  ;;  %697 = vmatprep.subr.mxu1 %v785_v1  ;;  %v45_v22 = vld [vmem:[%s1066_s0] sm:$0xff]  ;;  %v141_v24 = vld [vmem:[%s1069_s3 + $0x8] sm:$0xff]  ;;  %v233_v31 = vld [vmem:[%s1071_s5 + $0x18] sm:$0xff] }
   0xe   :  { %667 = vmatpush3.msra.mxu0 %v55_v11  ;;  %698 = vmatpush3.msra.mxu1 %v143_v12  ;;  %v140_v25 = vld [vmem:[%s1069_s3] sm:$0xff]  ;;  %v232_v32 = vld [vmem:[%s1071_s5 + $0x10] sm:$0xff]  ;;  %v231_v33 = vld [vmem:[%s1071_s5 + $0x8] sm:$0xff] }
   0xf   :  { %668 = vmatprep.subr.mxu0 %v785_v1  ;;  %699 = vmatprep.subr.mxu1 %v785_v1  ;;  %v594_v26 = vld [vmem:[%s1068_s2] ss:$0 sm:$0xff]  ;;  %v317_v40 = vld [vmem:[%s1073_s7 + $0x8] sm:$0xff]  ;;  %v403_v47 = vld [vmem:[%s1075_s9 + $0x18] sm:$0xff] }
  0x10   :  { %669 = vmatpush3.msra.mxu0 %v54_v13  ;;  %700 = vmatpush3.msra.mxu1 %v142_v23  ;;  %v230_v34 = vld [vmem:[%s1071_s5] sm:$0xff]  ;;  %v402_v48 = vld [vmem:[%s1075_s9 + $0x10] sm:$0xff]  ;;  %v401_v49 = vld [vmem:[%s1075_s9 + $0x8] sm:$0xff] }
  0x11   :  { %670 = vmatprep.subr.mxu0 %v785_v1  ;;  %701 = vmatprep.subr.mxu1 %v785_v1  ;;  %v595_v35 = vld [vmem:[%s1070_s4] ss:$0 sm:$0xff]  ;;  %v492_v51 = vld [vmem:[%s1077_s11 + $0x38] sm:$0xff]  ;;  %v491_v52 = vld [vmem:[%s1077_s11 + $0x30] sm:$0xff] }
  0x12   :  { %671 = vmatpush3.msra.mxu0 %v53_v14  ;;  %702 = vmatpush3.msra.mxu1 %v141_v24  ;;  %v316_v41 = vld [vmem:[%s1073_s7] sm:$0xff]  ;;  %v490_v53 = vld [vmem:[%s1077_s11 + $0x28] sm:$0xff]  ;;  %v488_v55 = vld [vmem:[%s1077_s11 + $0x18] sm:$0xff] }
  0x13   :  { %672 = vmatprep.subr.mxu0 %v785_v1  ;;  %703 = vmatprep.subr.mxu1 %v785_v1  ;;  %v597_v42 = vld [vmem:[%s1072_s6] ss:$0 sm:$0xff]  ;;  %v487_v61 = vld [vmem:[%s1077_s11 + $0x10] sm:$0xff]  ;;  %v486_v62 = vld [vmem:[%s1077_s11 + $0x8] sm:$0xff] }
  0x14   :  { %673 = vmatpush3.msra.mxu0 %v52_v15  ;;  %704 = vmatpush3.msra.mxu1 %v140_v25  ;;  %v400_v50 = vld [vmem:[%s1075_s9] sm:$0xff] }
  0x15   :  { %674 = vmatprep.subr.mxu0 %v785_v1  ;;  %708 = vmatprep.subr.mxu1 %v785_v1  ;;  %v489_v54 = vld [vmem:[%s1077_s11 + $0x20] sm:$0xff] }
  0x16   :  { %675 = vmatpush3.msra.mxu0 %v51_v16  ;;  %v599_v56 = vld [vmem:[%s1074_s8] ss:$0 sm:$0xff] }
  0x17   :  { %676 = vmatprep.subr.mxu0 %v785_v1  ;;  %v485_v63 = vld [vmem:[%s1077_s11] sm:$0xff]  ;;  %s787_s11 = smov [#allocation2]  }
  0x18   :  { %677 = vmatpush3.msra.mxu0 %v50_v17  ;;  %v601_v0 = vld [vmem:[%s1076_s10] ss:$0 sm:$0xff]  ;;  %s586_s10 = sshll.u32 %s787_s11, 4  ;;  %s587_s10 = int_to_ptr.vmem [resolvable:$true] %s586_s10 }
  0x19   :  { %678 = vmatprep.subr.mxu0 %v785_v1  ;;  %v603_v6 = vld [vmem:[%s1078_s12] ss:$0 sm:$0xff]  ;;  %s763_s20 = scalar_lea.vmem %s587_s10, 128  ;;  %p768_p1 = scmp.lt.s32.totalorder %s587_s10, %s587_s10 }
  0x1a   :  { %679 = vmatpush3.msra.mxu0 %v49_v18  ;;  %p764_p0 = scmp.ne.s32.totalorder %s587_s10, %s763_s20  ;;  %p769_p2 = scmp.lt.s32.totalorder %s763_s20, %s763_s20 }
  0x1b   :  { %680 = vmatprep.subr.mxu0 %v785_v1 }
  0x1c   :  { %681 = vmatpush3.msra.mxu0 %v48_v19  ;;  %p770_p3 = por %p769_p2, %p768_p1 }
  0x1d   :  { %682 = vmatprep.subr.mxu0 %v785_v1 }
  0x1e   :  { %683 = vmatpush3.msra.mxu0 %v47_v20  ;;  %p771_p4 = pnand %p770_p3, %p764_p0 }
  0x1f   :  { %684 = vmatprep.subr.mxu0 %v785_v1 }
  0x20   :  { %685 = vmatpush3.msra.mxu0 %v46_v21 }
  0x21   :  { %687 = vmatmul.mubr.f32.vlgmr.msra.gmra.mxu0 %v45_v22  ;;  %737 = vmatprep.subr.mxu0 %v785_v1 }
  0x22   :  { %753 = vmatprep.mubr.msk.f32.mxu0 %vm786_vm0, %v785_v1  ;;  %738 = vmatpush3.msra.mxu0 %v492_v51 }
  0x23   :  { %739 = vmatprep.subr.mxu0 %v785_v1 }
  0x24   :  { %740 = vmatpush3.msra.mxu0 %v491_v52 }
  0x25   :  { %741 = vmatprep.subr.mxu0 %v785_v1 }
  0x26   :  { %742 = vmatpush3.msra.mxu0 %v490_v53 }
  0x27   :  { %743 = vmatprep.subr.mxu0 %v785_v1 }
  0x28   :  { %744 = vmatpush3.msra.mxu0 %v489_v54 }
  0x29   :  { %745 = vmatprep.subr.mxu0 %v785_v1 }
  0x2a   :  { %746 = vmatpush3.msra.mxu0 %v488_v55 }
  0x2b   :  { %747 = vmatprep.subr.mxu0 %v785_v1 }
  0x2c   :  { %748 = vmatpush3.msra.mxu0 %v487_v61 }
  0x2d   :  { %749 = vmatprep.subr.mxu0 %v785_v1 }
  0x2e   :  { %750 = vmatpush3.msra.mxu0 %v486_v62 }
  0x2f   :  { %751 = vmatprep.subr.mxu0 %v785_v1 }
  0x30   :  { %752 = vmatpush3.msra.mxu0 %v485_v63 }
  0xe1   :  { %v135_v27 = vpop.f32.mrf.mxu0 }
  0xe2   :  { %v136_v28 = vadd.f32 %v594_v26, %v135_v27 }
  0xe3   :  { %v688_v29 = vpop.f32.mrf.mxu0 }
  0xe4   :  { %v139_v30 = vmax.f32 %v136_v28, 0.0 }
  0xe6   :  { %706 = vmatmul.mubr.msk.f32.vlgmr.msra.gmra.mxu1 %vm155_vm1, %v139_v30 }
  0xe7   :  { %709 = vmatpush3.msra.mxu1 %v233_v31  ;;  %716 = vmatprep.mubr.msk.f32.mxu1 %vm786_vm0, %v785_v1 }
  0xe8   :  { %710 = vmatprep.subr.mxu1 %v785_v1 }
  0xe9   :  { %711 = vmatpush3.msra.mxu1 %v232_v32 }
  0xea   :  { %712 = vmatprep.subr.mxu1 %v785_v1 }
  0xeb   :  { %713 = vmatpush3.msra.mxu1 %v231_v33 }
  0xec   :  { %714 = vmatprep.subr.mxu1 %v785_v1 }
  0xed   :  { %715 = vmatpush3.msra.mxu1 %v230_v34 }
  0xee   :  { %719 = vmatprep.subr.mxu1 %v785_v1 }
 0x1a6   :  { %v225_v36 = vpop.f32.mrf.mxu1 }
 0x1a7   :  { %v226_v37 = vadd.f32 %v595_v35, %v225_v36 }
 0x1a8   :  { %v707_v38 = vpop.f32.mrf.mxu1 }
 0x1a9   :  { %v229_v39 = vmax.f32 %v226_v37, 0.0 }
 0x1ab   :  { %717 = vmatmul.mubr.msk.f32.vlgmr.msra.gmra.mxu1 %vm241_vm2, %v229_v39 }
 0x1ac   :  { %723 = vmatprep.mubr.msk.f32.mxu1 %vm786_vm0, %v785_v1  ;;  %720 = vmatpush3.msra.mxu1 %v317_v40 }
 0x1ad   :  { %721 = vmatprep.subr.mxu1 %v785_v1 }
 0x1ae   :  { %722 = vmatpush3.msra.mxu1 %v316_v41 }
 0x1af   :  { %726 = vmatprep.subr.mxu1 %v785_v1 }
 0x26b   :  { %v311_v43 = vpop.f32.mrf.mxu1 }
 0x26c   :  { %v312_v44 = vadd.f32 %v597_v42, %v311_v43 }
 0x26d   :  { %v718_v45 = vpop.f32.mrf.mxu1 }
 0x26e   :  { %v315_v46 = vmax.f32 %v312_v44, 0.0 }
 0x270   :  { %724 = vmatmul.mubr.msk.f32.vlgmr.msra.gmra.mxu1 %vm325_vm3, %v315_v46 }
 0x271   :  { %727 = vmatpush3.msra.mxu1 %v403_v47  ;;  %734 = vmatprep.mubr.msk.f32.mxu1 %vm786_vm0, %v785_v1 }
 0x272   :  { %728 = vmatprep.subr.mxu1 %v785_v1 }
 0x273   :  { %729 = vmatpush3.msra.mxu1 %v402_v48 }
 0x274   :  { %730 = vmatprep.subr.mxu1 %v785_v1 }
 0x275   :  { %731 = vmatpush3.msra.mxu1 %v401_v49 }
 0x276   :  { %732 = vmatprep.subr.mxu1 %v785_v1 }
 0x277   :  { %733 = vmatpush3.msra.mxu1 %v400_v50 }
 0x330   :  { %v395_v57 = vpop.f32.mrf.mxu1 }
 0x331   :  { %v396_v58 = vadd.f32 %v599_v56, %v395_v57 }
 0x332   :  { %v725_v59 = vpop.f32.mrf.mxu1 }
 0x333   :  { %v399_v60 = vmax.f32 %v396_v58, 0.0 }
 0x335   :  { %735 = vmatmul.mubr.msk.f32.vlgmr.msra.gmra.mxu1 %vm241_vm2, %v399_v60 }
 0x3f5   :  { %v480_v2 = vpop.f32.mrf.mxu1 }
 0x3f6   :  { %v481_v3 = vadd.f32 %v601_v0, %v480_v2 }
 0x3f7   :  { %v736_v4 = vpop.f32.mrf.mxu1 }
 0x3f8   :  { %v484_v5 = vmax.f32 %v481_v3, 0.0 }
 0x3fa   :  { %754 = vmatmul.mubr.msk.f32.vlgmr.msra.gmra.mxu0 %vm155_vm1, %v484_v5 }
 0x4ba   :  { %v569_v1 = vpop.f32.mrf.mxu0 }
 0x4bb   :  { %v570_v7 = vadd.f32 %v603_v6, %v569_v1 }
 0x4bc   :  { %v755_v8 = vpop.f32.mrf.mxu0 }
 0x4bd   :  { %v605_v9 = vmul.f32 -1.442695, %v570_v7 }
 0x4bf   :  { %759 = vpow2.f32 %v605_v9 }
 0x4cc   :  { %v760_v10 = vpop.eup %759 }
 0x4cd   :  { %v576_v11 = vadd.f32 1.0, %v760_v10 }
 0x4cf   :  { %761 = vrcp.f32 %v576_v11 }
 0x4dc   :  { %v762_v12 = vpop.eup %761 }
 0x4dd   :  { %579 = vst [vmem:[#allocation2] sm:$0xff] %v762_v12 }
 0x4de   :  { %774 = shalt.err (!%p771_p4)
}
 0x4df   :  { %589 = dma.vmem_to_hbm [thread:$0]  %s587_s10, 128, %s1079_s13, [#allocation3]  }
 0x4e0   :  { %783 = dma.done.wait [#allocation3], 128  }
 0x4e1   :  { %784 = vsyncadd [#allocation3], 4294967168 }
 0x4e2   :  { %593 = vsyncpa [#allocation3], 1 }

</bundles_post_ra>
